<compile_context>
chip_gen: v5e
topology: v5e:2x2
jax: 0.10.0
libtpu: 0.0.40
codegen_flags: <defaults>
</compile_context>

<pallas_src>
import jax
import jax.numpy as jnp
from jax.experimental import pallas as pl
from jax.experimental.pallas import tpu as pltpu

# ---------------- sizes (small, consistent with the forward pass) ----------
B        = 2                       # batch
T        = 8                       # text sequence length
D_TEXT   = 32                      # text hidden size
N_VIEWS  = 2                       # number of vision inputs in the list
CIN, S   = 3, 16                   # vision channels / spatial (NCHW)
D_VIS    = CIN * S * S             # 768
D_AUD    = 32                      # audio feature size
C        = 128                     # number of classes (lane-aligned)
D_TOTAL  = D_VIS + D_TEXT + D_AUD  # 832, packed K  (vision FIRST -> lane aligned)
COL_VIS  = 0                       # vision cols [0, 768)
COL_TEXT = D_VIS                   # text   cols [768, 800)
COL_AUD  = D_VIS + D_TEXT          # audio  cols [800, 832)
ROWS     = 3 * B                   # 6   valid output rows (the dim-0 concat)
ROWS_PAD = 8                       # padded to a full sublane group


def chimera_kernel(text_ref, vis_ref, aud_ref, w_ref, bias_ref, out_ref, lhs_ref):
    # Zero the block-diagonal scratch every invocation (rows 6:8 stay zero, and
    # each branch's rows are zero outside its own column block).
    lhs_ref[...] = jnp.zeros_like(lhs_ref)

    # ---- text branch feature: mean over sequence (f32) ---------------------
    text_feat = jnp.mean(text_ref[...], axis=1)                    # (B, D_TEXT)

    # ---- vision branch: fold the view-mean BEFORE the linear head ----------
    # mean_n(x_n @ Wv + bv) == (mean_n x_n) @ Wv + bv  (head is linear)
    vis_mean = jnp.mean(vis_ref[...], axis=0)                      # (B, D_VIS)

    # ---- assemble block-diagonal LHS in bf16 VMEM scratch -------------------
    # rows 0:B   -> text_feat  in cols [768, 800)
    # rows B:2B  -> vis_mean   in cols [0,   768)   (lane-aligned full-vreg store)
    # rows 2B:3B -> audio      in cols [800, 832)
    lhs_ref[0 * B:1 * B, COL_TEXT:COL_TEXT + D_TEXT] = text_feat.astype(jnp.bfloat16)
    lhs_ref[1 * B:2 * B, COL_VIS:COL_VIS + D_VIS] = vis_mean.astype(jnp.bfloat16)
    lhs_ref[2 * B:3 * B, COL_AUD:COL_AUD + D_AUD] = aud_ref[...].astype(jnp.bfloat16)

    # ---- one fused MXU pass: bf16 inputs, f32 accumulation ------------------
    acc = jnp.dot(lhs_ref[...], w_ref[...],
                  preferred_element_type=jnp.float32)              # (8, C)

    # ---- single full-tile store + pre-broadcast bias ------------------------
    out_ref[...] = acc + bias_ref[...]


def chimera_forward(text_input, vision_inputs, audio_input, params):
    """text_input: (B, T, D_TEXT); vision_inputs: list of N (B, 3, S, S) NCHW;
    audio_input: (B, D_AUD).  Returns (3*B, C) f32 == torch.cat([t, v, a], 0)."""
    w_packed, bias = params

    # glue: ONE stack + ONE reshape; view n lives at vis[n] of (N_VIEWS, B, D_VIS)
    vis_stacked = jnp.stack(vision_inputs, axis=0).reshape(N_VIEWS, B, D_VIS)

    vmem = pl.BlockSpec(memory_space=pltpu.MemorySpace.VMEM)

    bytes_accessed = (text_input.size * 4 + vis_stacked.size * 4
                      + audio_input.size * 4 + w_packed.size * 2
                      + bias.size * 4 + ROWS_PAD * C * 4)
    cost = pl.CostEstimate(flops=2 * ROWS_PAD * D_TOTAL * C,
                           transcendentals=0,
                           bytes_accessed=bytes_accessed)

    out = pl.pallas_call(
        chimera_kernel,
        out_shape=jax.ShapeDtypeStruct((ROWS_PAD, C), jnp.float32),
        grid=(),
        in_specs=[vmem, vmem, vmem, vmem, vmem],
        out_specs=vmem,
        scratch_shapes=[pltpu.VMEM((ROWS_PAD, D_TOTAL), jnp.bfloat16)],
        cost_estimate=cost,
    )(text_input, vis_stacked, audio_input, w_packed, bias)

    return out[:ROWS]


chimera_forward = jax.jit(chimera_forward)


def make_params(key):
    ks = jax.random.split(key, 6)
    wt = jax.random.normal(ks[0], (D_TEXT, C), jnp.float32) * 0.02
    bt = jax.random.normal(ks[1], (1, C), jnp.float32) * 0.02
    wv = jax.random.normal(ks[2], (D_VIS, C), jnp.float32) * 0.02
    bv = jax.random.normal(ks[3], (1, C), jnp.float32) * 0.02
    wa = jax.random.normal(ks[4], (D_AUD, C), jnp.float32) * 0.02
    ba = jax.random.normal(ks[5], (1, C), jnp.float32) * 0.02

    # packed fused weight, VISION FIRST so the 768-wide block is lane-aligned;
    # bf16 halves the dominant HBM transfer.
    w_packed = jnp.concatenate([wv, wt, wa], axis=0).astype(jnp.bfloat16)  # (832, C)

    # pre-broadcast bias laid out to match the concatenated output rows
    # (rows 0:B text, B:2B vision, 2B:3B audio, padding rows zero).
    bias = jnp.concatenate([
        jnp.broadcast_to(bt, (B, C)),
        jnp.broadcast_to(bv, (B, C)),
        jnp.broadcast_to(ba, (B, C)),
        jnp.zeros((ROWS_PAD - ROWS, C), jnp.float32),
    ], axis=0)                                                              # (8, C)

    kernel_params = (w_packed, bias)
    ref_weights = (wt, bt, wv, bv, wa, ba)
    return kernel_params, ref_weights


if __name__ == "__main__":
    key = jax.random.PRNGKey(0)
    k_txt, k_v0, k_v1, k_aud, k_par = jax.random.split(key, 5)

    text_input = jax.random.normal(k_txt, (B, T, D_TEXT), jnp.float32)
    vision_inputs = [
        jax.random.normal(k_v0, (B, CIN, S, S), jnp.float32),   # NCHW
        jax.random.normal(k_v1, (B, CIN, S, S), jnp.float32),
    ]
    audio_input = jax.random.normal(k_aud, (B, D_AUD), jnp.float32)
    kernel_params, ref_weights = make_params(k_par)

    out = chimera_forward(text_input, vision_inputs, audio_input, kernel_params)
    out = jax.block_until_ready(out)

    # pure-JAX reference with the same bf16 rounding at the matmul inputs
    wt, bt, wv, bv, wa, ba = ref_weights

    def mm_bf16(a, w):
        return jnp.dot(a.astype(jnp.bfloat16), w.astype(jnp.bfloat16),
                       preferred_element_type=jnp.float32)

    t_ref = mm_bf16(text_input.mean(axis=1), wt) + bt
    v_mean = jnp.mean(jnp.stack([v.reshape(B, D_VIS) for v in vision_inputs]),
                      axis=0)
    v_ref = mm_bf16(v_mean, wv) + bv                 # == mean of per-view logits
    a_ref = mm_bf16(audio_input, wa) + ba
    ref = jnp.concatenate([t_ref, v_ref, a_ref], axis=0)

    assert out.shape == (ROWS, C)
    assert jnp.allclose(out, ref, atol=2e-3), "mismatch vs reference"

    print("KERNEL_OK")
</pallas_src>

<mosaic_0001>
module attributes {stable_mosaic.version = 11 : i64} {
  func.func @chimera_kernel(%arg0: memref<2x8x32xf32, #tpu.memory_space<vmem>>, %arg1: memref<2x2x768xf32, #tpu.memory_space<vmem>>, %arg2: memref<2x32xf32, #tpu.memory_space<vmem>>, %arg3: memref<832x128xbf16, #tpu.memory_space<vmem>>, %arg4: memref<8x128xf32, #tpu.memory_space<vmem>>, %arg5: memref<8x128xf32, #tpu.memory_space<vmem>>, %arg6: memref<8x832xbf16, #tpu.memory_space<vmem>>) attributes {dimension_semantics = [], scalar_prefetch = 0 : i64, scratch_operands = 1 : i64, tpu.core_type = #tpu.core_type<tc>} {
    %cst = arith.constant 0.000000e+00 : bf16
    %0 = vector.broadcast %cst : bf16 to vector<8x832xbf16>
    %c0 = arith.constant 0 : index
    %c0_0 = arith.constant 0 : index
    %1 = vector.load %arg6[%c0, %c0_0] : memref<8x832xbf16, #tpu.memory_space<vmem>>, vector<8x832xbf16>
    tpu.vector_store %arg6[%c0, %c0_0], %0 {strides = array<i32>} : memref<8x832xbf16, #tpu.memory_space<vmem>>, vector<8x832xbf16>,
    %c0_1 = arith.constant 0 : index
    %c0_2 = arith.constant 0 : index
    %c0_3 = arith.constant 0 : index
    %2 = vector.load %arg0[%c0_1, %c0_2, %c0_3] : memref<2x8x32xf32, #tpu.memory_space<vmem>>, vector<2x8x32xf32>
    %cst_4 = arith.constant dense<0.000000e+00> : vector<2x32xf32>
    %3 = vector.multi_reduction <add>, %2, %cst_4 [1] : vector<2x8x32xf32> to vector<2x32xf32>
    %cst_5 = arith.constant 8.000000e+00 : f32
    %4 = vector.broadcast %cst_5 : f32 to vector<2x32xf32>
    %5 = arith.divf %3, %4 : vector<2x32xf32>
    %c0_6 = arith.constant 0 : index
    %c0_7 = arith.constant 0 : index
    %c0_8 = arith.constant 0 : index
    %6 = vector.load %arg1[%c0_6, %c0_7, %c0_8] : memref<2x2x768xf32, #tpu.memory_space<vmem>>, vector<2x2x768xf32>
    %cst_9 = arith.constant dense<0.000000e+00> : vector<2x768xf32>
    %7 = vector.multi_reduction <add>, %6, %cst_9 [0] : vector<2x2x768xf32> to vector<2x768xf32>
    %cst_10 = arith.constant 2.000000e+00 : f32
    %8 = vector.broadcast %cst_10 : f32 to vector<2x768xf32>
    %9 = arith.divf %7, %8 : vector<2x768xf32>
    %10 = arith.truncf %5 : vector<2x32xf32> to vector<2x32xbf16>
    %c0_11 = arith.constant 0 : index
    %c768 = arith.constant 768 : index
    %11 = vector.load %arg6[%c0_11, %c768] : memref<8x832xbf16, #tpu.memory_space<vmem>>, vector<2x32xbf16>
    tpu.vector_store %arg6[%c0_11, %c768], %10 {strides = array<i32>} : memref<8x832xbf16, #tpu.memory_space<vmem>>, vector<2x32xbf16>,
    %12 = arith.truncf %9 : vector<2x768xf32> to vector<2x768xbf16>
    %c2 = arith.constant 2 : index
    %c0_12 = arith.constant 0 : index
    %13 = vector.load %arg6[%c2, %c0_12] : memref<8x832xbf16, #tpu.memory_space<vmem>>, vector<2x768xbf16>
    tpu.vector_store %arg6[%c2, %c0_12], %12 {strides = array<i32>} : memref<8x832xbf16, #tpu.memory_space<vmem>>, vector<2x768xbf16>,
    %c0_13 = arith.constant 0 : index
    %c0_14 = arith.constant 0 : index
    %14 = vector.load %arg2[%c0_13, %c0_14] : memref<2x32xf32, #tpu.memory_space<vmem>>, vector<2x32xf32>
    %15 = arith.truncf %14 : vector<2x32xf32> to vector<2x32xbf16>
    %c4 = arith.constant 4 : index
    %c800 = arith.constant 800 : index
    %16 = vector.load %arg6[%c4, %c800] : memref<8x832xbf16, #tpu.memory_space<vmem>>, vector<2x32xbf16>
    tpu.vector_store %arg6[%c4, %c800], %15 {strides = array<i32>} : memref<8x832xbf16, #tpu.memory_space<vmem>>, vector<2x32xbf16>,
    %c0_15 = arith.constant 0 : index
    %c0_16 = arith.constant 0 : index
    %17 = vector.load %arg6[%c0_15, %c0_16] : memref<8x832xbf16, #tpu.memory_space<vmem>>, vector<8x832xbf16>
    %c0_17 = arith.constant 0 : index
    %c0_18 = arith.constant 0 : index
    %18 = vector.load %arg3[%c0_17, %c0_18] : memref<832x128xbf16, #tpu.memory_space<vmem>>, vector<832x128xbf16>
    %cst_19 = arith.constant dense<0.000000e+00> : vector<8x128xf32>
    %19 = tpu.matmul %17, %18, %cst_19 {dimension_numbers = #tpu.dot_dimension_numbers<[1], [0], [0], [1], [0, 0, 1, 1], [], []>} : vector<8x832xbf16>, vector<832x128xbf16>, vector<8x128xf32> -> vector<8x128xf32>
    %c0_20 = arith.constant 0 : index
    %c0_21 = arith.constant 0 : index
    %20 = vector.load %arg4[%c0_20, %c0_21] : memref<8x128xf32, #tpu.memory_space<vmem>>, vector<8x128xf32>
    %21 = arith.addf %19, %20 : vector<8x128xf32>
    %c0_22 = arith.constant 0 : index
    %c0_23 = arith.constant 0 : index
    %22 = vector.load %arg5[%c0_22, %c0_23] : memref<8x128xf32, #tpu.memory_space<vmem>>, vector<8x128xf32>
    tpu.vector_store %arg5[%c0_22, %c0_23], %21 {strides = array<i32>} : memref<8x128xf32, #tpu.memory_space<vmem>>, vector<8x128xf32>,
    return
  }
}

</mosaic_0001>

<bundles_post_ra>
// kernel: chimera_forward.1
= control target key start
LH: loop header
LB: loop body
LE: loop exit
PB: predicated region body
PF: predicated region fallthrough
CT: control target
= control target key end

     0   :  { %10 = vsyncpa [#allocation4], 0  ;;  %s1156_s0 = inlined_call_operand.vmem [shape: f32[2,8,32], index: 0, kind: input, shape index: {}]   ;;  %s1157_s1 = inlined_call_operand.vmem [shape: f32[2,2,768], index: 1, kind: input, shape index: {}]   ;;  %s1158_s2 = inlined_call_operand.vmem [shape: f32[2,32], index: 2, kind: input, shape index: {}]   ;;  %s1159_s3 = inlined_call_operand.hbm [shape: bf16[832,128], index: 3, kind: input, shape index: {}]   ;;  %s1160_s4 = inlined_call_operand.vmem [shape: f32[8,128], index: 4, kind: input, shape index: {}]   ;;  %s1161_s5 = inlined_call_operand.hbm [shape: f32[8,128], index: 5, kind: output, shape index: {}]  }
   0x1   :  { %11 = vsyncpa [#allocation5], 0  ;;  %s22_s20 = sshll.u32 %s1159_s3, 4  ;;  %s1057_s21 = smov [#allocation3]   ;;  %s23_s20 = int_to_ptr.hbm [resolvable:$true] %s22_s20 }
   0x2   :  { %s24_s22 = sshll.u32 %s1057_s21, 4  ;;  %s1058_s23 = smov 64   ;;  %s25_s22 = int_to_ptr.vmem [resolvable:$true] %s24_s22 }
   0x3   :  { %s1059_s24 = smov 4  }
   0x4   :  { %30 = dma.hbm_to_vmem [thread:$0]  %s23_s20, 6656, %s25_s22, [#allocation4], %s1058_s23, %s1058_s23, %s1059_s24  }
   0x5   :  { %1053 = dma.done.wait [#allocation4], 6656  }
   0x6   :  { %1054 = vsyncadd [#allocation4], 4294960640  ;;  %v165_v0 = vld [vmem:[%s1158_s2] sm:$0x3]  ;;  %v947_v4 = vld [vmem:[#allocation3 + $0x30] sm:$0xff]  ;;  %s1060_s3 = smov 32  }
   0x7   :  { %v948_v1 = vld [vmem:[#allocation3 + $0x38] sm:$0xff]  ;;  %v166_v3 = vpack.c.bf16 %v165_v0, %v165_v0  ;;  %v955_v5 = vld [vmem:[#allocation3 + $0x70] sm:$0xff]  ;;  %v946_v10 = vld [vmem:[#allocation3 + $0x28] sm:$0xff]  ;;  %v1061_v18 = vmov 0   ;;  %v1062_v20 = vmov 2.0   ;;  %vm41_vm0 = vcmask 519168  }
   0x8   :  { %v956_v2 = vld [vmem:[#allocation3 + $0x78] sm:$0xff]  ;;  %623 = vmatpush.bf16.msra.mxu0 %v948_v1  ;;  %v963_v8 = vld [vmem:[#allocation3 + $0xb0] sm:$0xff]  ;;  %v954_v11 = vld [vmem:[#allocation3 + $0x68] sm:$0xff]  ;;  %39 = vst [vmem:[#allocation2 + $0x8] sm:$0xff] %v1061_v18  ;;  %1001 = vrcp.f32 %v1062_v20  ;;  %vm45_vm1 = vcmask 261120   ;;  %vm106_vm2 = vcmask 1041408  }
   0x9   :  { %636 = vmatpush.bf16.msra.mxu1 %v956_v2  ;;  %v964_v6 = vld [vmem:[#allocation3 + $0xb8] sm:$0xff]  ;;  %v168_v7 = vrot.slane %v166_v3, 6  ;;  %v971_v12 = vld [vmem:[#allocation3 + $0xf0] sm:$0xff]  ;;  %v962_v13 = vld [vmem:[#allocation3 + $0xa8] sm:$0xff]  ;;  %38 = vst [vmem:[#allocation2] sm:$0xff] %v1061_v18  ;;  %v1063_v44 = vmov 8.0  }
   0xa   :  { %649 = vmatpush.bf16.msra.mxu2 %v964_v6  ;;  %v972_v9 = vld [vmem:[#allocation3 + $0xf8] sm:$0xff]  ;;  %v945_v14 = vld [vmem:[#allocation3 + $0x20] sm:$0xff]  ;;  %v970_v16 = vld [vmem:[#allocation3 + $0xe8] sm:$0xff]  ;;  %40 = vst [vmem:[#allocation2 + $0x10] sm:$0xff] %v1061_v18  ;;  %1003 = vrcp.f32 %v1063_v44  ;;  %vm144_vm5 = vcmask 1041409   ;;  %vm148_vm6 = vcmask 253952  }
   0xb   :  { %169 = vrot.lane.b32.xlu0 %v168_v7, %s1060_s3  ;;  %662 = vmatpush.bf16.msra.mxu3 %v972_v9  ;;  %v953_v15 = vld [vmem:[#allocation3 + $0x60] sm:$0xff]  ;;  %v944_v21 = vld [vmem:[#allocation3 + $0x18] sm:$0xff]  ;;  %v943_v26 = vld [vmem:[#allocation3 + $0x10] sm:$0xff]  ;;  %42 = vst.msk [vmem:[#allocation2 + $0x18] sm:$0xf] %vm41_vm0, %v1061_v18  ;;  %vm172_vm7 = vcmask 518402  }
   0xc   :  { %624 = vmatpush.bf16.msra.mxu0 %v947_v4  ;;  %v961_v17 = vld [vmem:[#allocation3 + $0xa0] sm:$0xff]  ;;  %v952_v22 = vld [vmem:[#allocation3 + $0x58] sm:$0xff]  ;;  %v951_v27 = vld [vmem:[#allocation3 + $0x50] sm:$0xff]  ;;  %vm619_vm8 = vcmask 523264   ;;  %s1064_s13 = smov [#allocation6]   ;;  %s722_s16 = sshll.u32 %s1161_s5, 4  ;;  %s723_s16 = int_to_ptr.hbm [resolvable:$true] %s722_s16 }
   0xd   :  { %637 = vmatpush.bf16.msra.mxu1 %v955_v5  ;;  %v69_v19 = vld [vmem:[%s1157_s1] sm:$0xff]  ;;  %v959_v28 = vld [vmem:[#allocation3 + $0x90] sm:$0xff]  ;;  %v71_v30 = vld [vmem:[%s1157_s1 + $0xc] sm:$0xff]  ;;  %s720_s14 = sshll.u32 %s1064_s13, 4  ;;  %s721_s14 = int_to_ptr.vmem [resolvable:$true] %s720_s14 }
   0xe   :  { %650 = vmatpush.bf16.msra.mxu2 %v963_v8  ;;  %77 = vst [vmem:[#allocation1] ss:$4 sm:$0xff] %v69_v19  ;;  %v969_v23 = vld [vmem:[#allocation3 + $0xe0] sm:$0xff]  ;;  %v960_v24 = vld [vmem:[#allocation3 + $0x98] sm:$0xff]  ;;  %v1104_v25 = vpop.eup %1001  ;;  %v942_v36 = vld [vmem:[#allocation3 + $0x8] sm:$0xff] }
   0xf   :  { %663 = vmatpush.bf16.msra.mxu3 %v971_v12  ;;  %v968_v29 = vld [vmem:[#allocation3 + $0xd8] sm:$0xff]  ;;  %v126_v31 = vmul.f32 2.0, %v1104_v25  ;;  %v950_v37 = vld [vmem:[#allocation3 + $0x48] sm:$0xff]  ;;  %v967_v39 = vld [vmem:[#allocation3 + $0xd0] sm:$0xff]  ;;  %vm130_vm3 = vweird.f32 %v1104_v25 }
  0x10   :  { %625 = vmatpush.bf16.msra.mxu0 %v946_v10  ;;  %v958_v40 = vld [vmem:[#allocation3 + $0x88] sm:$0xff]  ;;  %v43_v42 = vld [vmem:[%s1156_s0] sm:$0xff]  ;;  %v979_v60 = vld [vmem:[#allocation3 + $0x130] sm:$0xff]  ;;  %v1004_v6 = vpop.eup %1003 }
  0x11   :  { %638 = vmatpush.bf16.msra.mxu1 %v954_v11  ;;  %v127_v38 = vsub.f32 1.0, %v126_v31  ;;  %v44_v43 = vld [vmem:[%s1156_s0 + $0x8] sm:$0xff]  ;;  %v46_v48 = vsel %vm45_vm1, %v43_v42, 0.0  ;;  %v980_v50 = vld [vmem:[#allocation3 + $0x138] sm:$0xff]  ;;  %v987_v7 = vld [vmem:[#allocation3 + $0x170] sm:$0xff]  ;;  %vm65_vm4 = vweird.f32 %v1004_v6 }
  0x12   :  { %651 = vmatpush.bf16.msra.mxu2 %v962_v13  ;;  %v941_v45 = vld [vmem:[#allocation3] sm:$0xff]  ;;  %v53_v49 = vsel %vm45_vm1, %v44_v43, 0.0  ;;  %v988_v51 = vld [vmem:[#allocation3 + $0x178] sm:$0xff]  ;;  %v47_v52 = vrot.slane %v46_v48, 4  ;;  %v966_v58 = vld [vmem:[#allocation3 + $0xc8] sm:$0xff] }
  0x13   :  { %664 = vmatpush.bf16.msra.mxu3 %v970_v16  ;;  %v128_v41 = vmul.f32 %v1104_v25, %v127_v38  ;;  %v949_v46 = vld [vmem:[#allocation3 + $0x40] sm:$0xff]  ;;  %v54_v53 = vrot.slane %v53_v49, 4  ;;  %v992_v59 = vld [vmem:[#allocation3 + $0x198] sm:$0xff] }
  0x14   :  { %626 = vmatpush.bf16.msra.mxu0 %v945_v14  ;;  %v957_v54 = vld [vmem:[#allocation3 + $0x80] sm:$0xff]  ;;  %v48_v63 = vadd.f32 %v47_v52, %v46_v48  ;;  %v976_v43 = vld [vmem:[#allocation3 + $0x118] sm:$0xff] }
  0x15   :  { %639 = vmatpush.bf16.msra.mxu1 %v953_v15  ;;  %v80_v32 = vld.sshfl [vmem:[#allocation1] sm:$0xff pattern:$0x73625140]  ;;  %v81_v33 = vld.sshfl [vmem:[#allocation1 + $0x8] sm:$0xff pattern:$0x73625140]  ;;  %v129_v47 = vadd.f32 %v1104_v25, %v128_v41  ;;  %v55_v0 = vadd.f32 %v54_v53, %v53_v49 }
  0x16   :  { %652 = vmatpush.bf16.msra.mxu2 %v961_v17  ;;  %v82_v34 = vld.sshfl [vmem:[#allocation1 + $0x10] sm:$0xff pattern:$0x73625140]  ;;  %v83_v35 = vld.sshfl [vmem:[#allocation1 + $0x18] sm:$0xff pattern:$0x73625140] }
  0x17   :  { %665 = vmatpush.bf16.msra.mxu3 %v969_v23  ;;  %86 = vst [vmem:[#allocation1] ss:$4 sm:$0xff] %v71_v30  ;;  %v113_v55 = vsel %vm106_vm2, %v82_v34, 0.0  ;;  %v116_v56 = vsel %vm106_vm2, %v83_v35, 0.0  ;;  %v107_v57 = vsel %vm106_vm2, %v80_v32, 0.0  ;;  %v1129_v3 = vsel %vm130_vm3, %v1104_v25, %v129_v47  ;;  %v965_v15 = vld [vmem:[#allocation3 + $0xc0] sm:$0xff] }
  0x18   :  { %627 = vmatpush.bf16.msra.mxu0 %v944_v21  ;;  %v110_v5 = vsel %vm106_vm2, %v81_v33, 0.0  ;;  %v49_v12 = vrot.slane %v48_v63, 2  ;;  %v56_v16 = vrot.slane %v55_v0, 2  ;;  %v61_v17 = vmul.f32 8.0, %v1004_v6  ;;  %v978_v25 = vld [vmem:[#allocation3 + $0x128] sm:$0xff]  ;;  %v985_v38 = vld [vmem:[#allocation3 + $0x160] sm:$0xff] }
  0x19   :  { %640 = vmatpush.bf16.msra.mxu1 %v952_v22  ;;  %v984_v44 = vld [vmem:[#allocation3 + $0x158] sm:$0xff] }
  0x1a   :  { %653 = vmatpush.bf16.msra.mxu2 %v960_v24  ;;  %v50_v21 = vadd.f32 %v49_v12, %v48_v63  ;;  %v57_v23 = vadd.f32 %v56_v16, %v55_v0  ;;  %v62_v24 = vsub.f32 1.0, %v61_v17  ;;  %v70_v63 = vld [vmem:[%s1157_s1 + $0x8] sm:$0xf]  ;;  %v72_v0 = vld [vmem:[%s1157_s1 + $0x14] sm:$0xf]  ;;  %v974_v16 = vld [vmem:[#allocation3 + $0x108] sm:$0xff] }
  0x1b   :  { %666 = vmatpush.bf16.msra.mxu3 %v968_v29  ;;  %79 = vst [vmem:[#allocation1 + $0x20] ss:$4 sm:$0xff] %v70_v63  ;;  %v991_v17 = vld [vmem:[#allocation3 + $0x190] sm:$0xff] }
  0x1c   :  { %628 = vmatpush.bf16.msra.mxu0 %v943_v26  ;;  %v986_v26 = vld [vmem:[#allocation3 + $0x168] sm:$0xff]  ;;  %v51_v29 = vrot.slane %v50_v21, 1  ;;  %v58_v30 = vrot.slane %v57_v23, 1  ;;  %v63_v31 = vmul.f32 %v1004_v6, %v62_v24 }
  0x1d   :  { %641 = vmatpush.bf16.msra.mxu1 %v951_v27 }
  0x1e   :  { %654 = vmatpush.bf16.msra.mxu2 %v959_v28  ;;  %v90_v61 = vld.sshfl [vmem:[#allocation1 + $0x10] sm:$0xff pattern:$0x73625140]  ;;  %v91_v62 = vld.sshfl [vmem:[#allocation1 + $0x18] sm:$0xff pattern:$0x73625140]  ;;  %v52_v34 = vadd.f32 %v51_v29, %v50_v21  ;;  %v59_v35 = vadd.f32 %v58_v30, %v57_v23 }
  0x1f   :  { %667 = vmatpush.bf16.msra.mxu3 %v967_v39  ;;  %v114_v1 = vsel %vm106_vm2, %v90_v61, 0.0  ;;  %v117_v2 = vsel %vm106_vm2, %v91_v62, 0.0  ;;  %v88_v4 = vld.sshfl [vmem:[#allocation1] sm:$0xff pattern:$0x73625140] }
  0x20   :  { %629 = vmatpush.bf16.msra.mxu0 %v942_v36  ;;  %v115_v8 = vadd.f32 %v114_v1, %v113_v55  ;;  %v118_v9 = vadd.f32 %v117_v2, %v116_v56  ;;  %v89_v10 = vld.sshfl [vmem:[#allocation1 + $0x8] sm:$0xff pattern:$0x73625140]  ;;  %v108_v11 = vsel %vm106_vm2, %v88_v4, 0.0  ;;  %v64_v36 = vadd.f32 %v1004_v6, %v63_v31  ;;  %v983_v55 = vld [vmem:[#allocation3 + $0x150] sm:$0xff]  ;;  %v282_v31 = vld [vmem:[%s1160_s4] sm:$0xff] }
  0x21   :  { %642 = vmatpush.bf16.msra.mxu1 %v950_v37  ;;  %v109_v13 = vadd.f32 %v108_v11, %v107_v57  ;;  %v111_v14 = vsel %vm106_vm2, %v89_v10, 0.0  ;;  %v977_v37 = vld [vmem:[#allocation3 + $0x120] sm:$0xff] }
  0x22   :  { %655 = vmatpush.bf16.msra.mxu2 %v958_v40  ;;  %v134_v18 = vmul.f32 %v1129_v3, %v115_v8  ;;  %v135_v19 = vmul.f32 %v1129_v3, %v118_v9  ;;  %v112_v20 = vadd.f32 %v111_v14, %v110_v5  ;;  %v66_v40 = vsel %vm65_vm4, %v1004_v6, %v64_v36  ;;  %v84_v1 = vld.sshfl [vmem:[#allocation1 + $0x20] sm:$0xff pattern:$0x73625140]  ;;  %v85_v2 = vld.sshfl [vmem:[#allocation1 + $0x28] sm:$0xff pattern:$0x73625140] }
  0x23   :  { %668 = vmatpush.bf16.msra.mxu3 %v966_v58  ;;  %v132_v22 = vmul.f32 %v1129_v3, %v109_v13  ;;  %v67_v41 = vmul.f32 %v66_v40, %v52_v34  ;;  %v68_v42 = vmul.f32 %v66_v40, %v59_v35  ;;  %87 = vst [vmem:[#allocation1 + $0x20] ss:$4 sm:$0xff] %v72_v0  ;;  %v119_v6 = vsel %vm106_vm2, %v84_v1, 0.0  ;;  %v981_v21 = vld [vmem:[#allocation3 + $0x140] sm:$0xff] }
  0x24   :  { %630 = vmatpush.bf16.msra.mxu0 %v941_v45  ;;  %v151_v27 = vpack.c.bf16 %v135_v19, %v134_v18  ;;  %v133_v28 = vmul.f32 %v1129_v3, %v112_v20  ;;  %v122_v8 = vsel %vm106_vm2, %v85_v2, 0.0  ;;  %v982_v18 = vld [vmem:[#allocation3 + $0x148] sm:$0xff]  ;;  %v973_v19 = vld [vmem:[#allocation3 + $0x100] sm:$0xff] }
  0x25   :  { %643 = vmatpush.bf16.msra.mxu1 %v949_v46  ;;  %v138_v45 = vpack.c.bf16 %v67_v41, %v67_v41  ;;  %v139_v46 = vpack.c.bf16 %v68_v42, %v68_v42  ;;  %v990_v20 = vld [vmem:[#allocation3 + $0x188] sm:$0xff] }
  0x26   :  { %656 = vmatpush.bf16.msra.mxu2 %v957_v54  ;;  %v157_v32 = vrot.slane %v151_v27, 7  ;;  %v150_v33 = vpack.c.bf16 %v133_v28, %v132_v22 }
  0x27   :  { %669 = vmatpush.bf16.msra.mxu3 %v965_v15  ;;  %v142_v47 = vunpack.c.l.b16 %v138_v45  ;;  %v143_v48 = vunpack.c.l.b16 %v139_v46 }
  0x28   :  { %675 = vmatpush.bf16.msrb.mxu0 %v980_v50  ;;  %163 = vst [vmem:[#allocation2 + $0x8] sm:$0x22] %v157_v32  ;;  %v156_v39 = vrot.slane %v150_v33, 7 }
  0x29   :  { %688 = vmatpush.bf16.msrb.mxu1 %v988_v51  ;;  %v975_v51 = vld [vmem:[#allocation3 + $0x110] sm:$0xff]  ;;  %v145_v53 = vsel %vm144_vm5, %v143_v48, %v142_v47 }
  0x2a   :  { %705 = vmatpush.bf16.msrb.mxu2 %v992_v59  ;;  %162 = vst [vmem:[#allocation2] sm:$0x22] %v156_v39  ;;  %v146_v56 = vpack.c.b16 %v145_v53, %v145_v53  ;;  %v92_v4 = vld.sshfl [vmem:[#allocation1 + $0x20] sm:$0xff pattern:$0x73625140] }
  0x2b   :  { %v93_v5 = vld.sshfl [vmem:[#allocation1 + $0x28] sm:$0xff pattern:$0x73625140] }
  0x2c   :  { %676 = vmatpush.bf16.msrb.mxu0 %v979_v60  ;;  %149 = vst.msk [vmem:[#allocation2 + $0x18] sm:$0x1] %vm148_vm6, %v146_v56  ;;  %v123_v9 = vsel %vm106_vm2, %v93_v5, 0.0 }
  0x2d   :  { %689 = vmatpush.bf16.msrb.mxu1 %v987_v7  ;;  %v120_v7 = vsel %vm106_vm2, %v92_v4, 0.0  ;;  %v124_v11 = vadd.f32 %v123_v9, %v122_v8 }
  0x2e   :  { %v121_v10 = vadd.f32 %v120_v7, %v119_v6  ;;  %706 = vmatpush.bf16.msrb.mxu2 %v991_v17 }
  0x2f   :  { %v175_v49 = vld [vmem:[#allocation2 + $0x8] sm:$0xff]  ;;  %v137_v13 = vmul.f32 %v1129_v3, %v124_v11 }
  0x30   :  { %677 = vmatpush.bf16.msrb.mxu0 %v978_v25  ;;  %v289_v50 = vunpack.c.l.b16 %v175_v49  ;;  %v290_v52 = vunpack.c.h.b16 %v175_v49  ;;  %v136_v12 = vmul.f32 %v1129_v3, %v121_v10 }
  0x31   :  { %690 = vmatpush.bf16.msrb.mxu1 %v986_v26  ;;  %v174_v54 = vld [vmem:[#allocation2] sm:$0xff] }
  0x32   :  { %v296_v57 = vpack.c.b16 %v289_v50, %v289_v50  ;;  %v287_v58 = vunpack.c.l.b16 %v174_v54  ;;  %v288_v59 = vunpack.c.h.b16 %v174_v54  ;;  %v297_v60 = vpack.c.b16 %v290_v52, %v290_v52  ;;  %707 = vmatpush.bf16.msrb.mxu2 %v990_v20  ;;  %v989_v26 = vld [vmem:[#allocation3 + $0x180] sm:$0xff] }
  0x33   :  { %v152_v14 = vpack.c.bf16 %v137_v13, %v136_v12 }
  0x34   :  { %678 = vmatpush.bf16.msrb.mxu0 %v977_v37  ;;  %657 = vmatmul.bf16.vlgmr.msra.gmra.mxu2 %v296_v57  ;;  %v294_v61 = vpack.c.b16 %v287_v58, %v287_v58  ;;  %v295_v62 = vpack.c.b16 %v288_v59, %v288_v59 }
  0x35   :  { %691 = vmatpush.bf16.msrb.mxu1 %v985_v38  ;;  %670 = vmatmul.bf16.vlgmr.msra.gmra.mxu3 %v297_v60  ;;  %v158_v15 = vrot.slane %v152_v14, 7 }
  0x36   :  { %631 = vmatmul.bf16.vlgmr.msra.gmra.mxu0 %v294_v61  ;;  %644 = vmatmul.bf16.vlgmr.msra.gmra.mxu1 %v295_v62 }
  0x37   :  { %164 = vst [vmem:[#allocation2 + $0x10] sm:$0x22] %v158_v15  ;;  %708 = vmatpush.bf16.msrb.mxu2 %v989_v26 }
  0x38   :  { %679 = vmatpush.bf16.msrb.mxu0 %v976_v43 }
  0x39   :  { %692 = vmatpush.bf16.msrb.mxu1 %v984_v44 }
  0x3c   :  { %680 = vmatpush.bf16.msrb.mxu0 %v975_v51 }
  0x3d   :  { %693 = vmatpush.bf16.msrb.mxu1 %v983_v55 }
  0x3e   :  { %v176_v22 = vld [vmem:[#allocation2 + $0x10] sm:$0xff] }
  0x3f   :  { %v291_v23 = vunpack.c.l.b16 %v176_v22  ;;  %v292_v24 = vunpack.c.h.b16 %v176_v22 }
  0x40   :  { %681 = vmatpush.bf16.msrb.mxu0 %v974_v16 }
  0x41   :  { %694 = vmatpush.bf16.msrb.mxu1 %v982_v18  ;;  %v298_v25 = vpack.c.b16 %v291_v23, %v291_v23  ;;  %v299_v3 = vpack.c.b16 %v292_v24, %v292_v24 }
  0x44   :  { %682 = vmatpush.bf16.msrb.mxu0 %v973_v19 }
  0x45   :  { %695 = vmatpush.bf16.msrb.mxu1 %v981_v21 }
  0x47   :  { %683 = vmatmul.bf16.vlgmr.msrb.gmra.mxu0 %v298_v25 }
  0x48   :  { %696 = vmatmul.bf16.vlgmr.msrb.gmra.mxu1 %v299_v3 }
  0x7d   :  { %v170_v27 = vpop.permute.xlu0 %169 }
  0x7e   :  { %173 = vst.msk [vmem:[#allocation2 + $0x18] sm:$0x4] %vm172_vm7, %v170_v27 }
  0x85   :  { %v177_v28 = vld [vmem:[#allocation2 + $0x18] sm:$0xf] }
  0x86   :  { %v293_v29 = vunpack.c.l.b16 %v177_v28 }
  0x88   :  { %v300_v30 = vpack.c.b16 %v293_v29, %v293_v29 }
  0x8a   :  { %940 = vmatmul.msk.bf16.vlgmr.msrb.gmra.mxu2 %vm619_vm8, %v300_v30 }
  0xb3   :  { %v632_v32 = vpop.f32.mrf.mxu0  ;;  %v645_v33 = vpop.f32.mrf.mxu1 }
  0xb4   :  { %v633_v34 = vadd.f32 %v632_v32, %v282_v31 }
  0xb6   :  { %v646_v35 = vadd.f32 %v645_v33, %v633_v34 }
  0xb7   :  { %v658_v36 = vpop.f32.mrf.mxu2 }
  0xb8   :  { %v659_v37 = vadd.f32 %v658_v36, %v646_v35  ;;  %v671_v38 = vpop.f32.mrf.mxu3 }
  0xba   :  { %v672_v39 = vadd.f32 %v671_v38, %v659_v37 }
  0xbb   :  { %v634_v40 = vpop.f32.mrf.mxu0  ;;  %v647_v41 = vpop.f32.mrf.mxu1 }
  0xbf   :  { %v660_v42 = vpop.f32.mrf.mxu2 }
  0xc0   :  { %v673_v43 = vpop.f32.mrf.mxu3 }
  0xc4   :  { %v684_v44 = vpop.f32.mrf.mxu0 }
  0xc5   :  { %v697_v45 = vpop.f32.mrf.mxu1  ;;  %v685_v48 = vadd.f32 %v684_v44, %v672_v39 }
  0xc7   :  { %v698_v49 = vadd.f32 %v697_v45, %v685_v48 }
  0xcc   :  { %v686_v46 = vpop.f32.mrf.mxu0 }
  0xcd   :  { %v699_v47 = vpop.f32.mrf.mxu1 }
 0x10d   :  { %v710_v50 = vpop.f32.mrf.mxu2 }
 0x10e   :  { %v711_v51 = vadd.f32 %v710_v50, %v698_v49 }
 0x110   :  { %714 = vst [vmem:[#allocation6] sm:$0xff] %v711_v51 }
 0x111   :  { %725 = dma.vmem_to_hbm [thread:$0]  %s721_s14, 128, %s723_s16, [#allocation5]  }
 0x115   :  { %v712_v52 = vpop.f32.mrf.mxu2 }
 0x116   :  { %1055 = dma.done.wait [#allocation5], 128  }
 0x117   :  { %1056 = vsyncadd [#allocation5], 4294967168 }
 0x118   :  { %730 = vsyncpa [#allocation4], 1 }
 0x119   :  { %731 = vsyncpa [#allocation5], 1 }

</bundles_post_ra>
